<compile_context>
chip_gen: v7x
topology: tpu7x:2x2x1
jax: 0.10.0
libtpu: 0.0.40
codegen_flags: <defaults>
</compile_context>

<pallas_src>
import math
from functools import partial

import numpy as np
import jax
import jax.numpy as jnp
from jax.experimental import pallas as pl
from jax.experimental.pallas import tpu as pltpu


def _device_kind() -> str:
    try:
        return jax.devices()[0].device_kind.lower()
    except Exception:
        return ""


def _mha_fused_kernel(q_ref, k_ref, v_ref, m_ref,
                      wqkv_ref, bqkv_ref, wo_ref, bo_ref,
                      o_ref, k_cache, v_cache,
                      *, h, d_k, scale, compute_dtype, softmax_dtype, approx_recip):
    """One (batch, query-tile) grid step.

    K/V projections run once per batch (the query-tile axis is "arbitrary", so i runs
    sequentially within a batch) and are cached in VMEM scratch in compute_dtype.
    Each step then does: Q projection -> per-head softmax(QK^T)V -> head concat ->
    single output projection, all in VMEM.
    """
    cd = compute_dtype
    i = pl.program_id(1)

    # ---- K/V projections: done ONCE per batch, not once per query tile ----
    @pl.when(i == 0)
    def _():
        xk = k_ref[0].astype(cd)                                       # (S, D)
        xv = v_ref[0].astype(cd)
        kp = jnp.dot(xk, wqkv_ref[1], preferred_element_type=jnp.float32) + bqkv_ref[1]
        vp = jnp.dot(xv, wqkv_ref[2], preferred_element_type=jnp.float32) + bqkv_ref[2]
        k_cache[...] = kp.astype(cd)
        v_cache[...] = vp.astype(cd)

    # ---- Q projection for this tile; 1/sqrt(d_k) folded in once; single cast to cd ----
    xq = q_ref[0].astype(cd)                                           # (tq, D)
    q = jnp.dot(xq, wqkv_ref[0], preferred_element_type=jnp.float32) + bqkv_ref[0]
    q = (q * scale).astype(cd)

    kc = k_cache[...]                                                  # (S, D) compute dtype
    vc = v_cache[...]

    # Query-row padding mask (spec: mask.unsqueeze(1).unsqueeze(-1) broadcasts over keys
    # and heads).  Compare hoisted out of the head loop.
    row_masked = m_ref[0] == 0.0                                       # (tq, 1) bool

    heads = []
    for hh in range(h):                                                # static head loop
        sl = slice(hh * d_k, (hh + 1) * d_k)
        qh, kh, vh = q[:, sl], kc[:, sl], vc[:, sl]

        # QK^T without materializing kh.T: contract the last dims on the MXU directly.
        s = jax.lax.dot_general(qh, kh, (((1,), (1,)), ((), ())),
                                preferred_element_type=jnp.float32)    # (tq, S) f32
        s = jnp.where(row_masked, -1e9, s)                             # masked_fill(mask==0)
        s = s - jnp.max(s, axis=-1, keepdims=True)

        p = jnp.exp(s.astype(softmax_dtype))                           # bf16 EUP on v6e/v7x
        denom = jnp.sum(p, axis=-1, keepdims=True, dtype=jnp.float32)  # row-sum stays f32
        inv = pl.reciprocal(denom, approx=approx_recip)                # exact on f32 path
        p = (p * inv.astype(p.dtype)).astype(cd)
        # TODO(synk): attention-weight dropout (p=0.1) is training-only; eval mode = identity.

        heads.append(jnp.dot(p, vh, preferred_element_type=jnp.float32))   # (tq, d_k)

    # Head concat, then ONE (tq,D)@(D,D) output projection (contraction depth = D).
    o = jnp.concatenate(heads, axis=-1).astype(cd)                     # (tq, D)
    out = jnp.dot(o, wo_ref[...], preferred_element_type=jnp.float32) + bo_ref[...]
    o_ref[0] = out.astype(o_ref.dtype)


class MultiHeadedAttentionPallas:
    """Pallas-TPU forward pass of the PyTorch MultiHeadedAttention module (eval mode)."""

    def __init__(self, h, d_model, key, dropout=0.1, compute_dtype=jnp.bfloat16):
        assert d_model % h == 0
        self.h = h
        self.d_k = d_model // h
        self.d_model = d_model
        self.dropout = dropout            # training-only; forward here is eval mode
        self.compute_dtype = compute_dtype
        self._f32_compute = np.dtype(compute_dtype) == np.dtype(np.float32)

        keys = jax.random.split(key, 8)
        bound = 1.0 / math.sqrt(d_model)  # torch.nn.Linear-style uniform init
        ws, bs = [], []
        for i in range(4):
            ws.append(jax.random.uniform(keys[2 * i], (d_model, d_model),
                                         jnp.float32, -bound, bound))   # stored as W^T
            bs.append(jax.random.uniform(keys[2 * i + 1], (1, d_model),
                                         jnp.float32, -bound, bound))
        # f32 masters (also used by the pure-JAX reference)
        self.w_qkv = jnp.stack(ws[:3])    # (3, D, D)  -> Wq, Wk, Wv
        self.b_qkv = jnp.stack(bs[:3])    # (3, 1, D)
        self.w_out = ws[3]                # (D, D)
        self.b_out = bs[3]                # (1, D)
        # Kernel-side copies already in compute_dtype: halves weight HBM traffic / VMEM
        # residency for bf16 and removes per-grid-step in-kernel casts.
        self.w_qkv_c = self.w_qkv.astype(compute_dtype)
        self.w_out_c = self.w_out.astype(compute_dtype)

    def __call__(self, query, key, value, mask=None):
        B, S, D = query.shape
        if mask is None:
            mask = jnp.ones((B, S), jnp.float32)
        mask3 = mask.astype(jnp.float32).reshape(B, S, 1)    # per-QUERY-row padding mask

        kind = _device_kind()
        is_v5 = "v5" in kind

        # Query tile: 256 feeds the 256-deep MXU on v6e/v7x; keep 128 on v5e (4x128 MXU).
        tq_cap = 128 if is_v5 else 256
        tq = S if S <= tq_cap else tq_cap
        nq = pl.cdiv(S, tq)
        # TODO(synk): for very long S, add a kv grid axis with flash-style online softmax so
        # the cached (S, D) projected K/V and the (tq, S) score tile stay bounded on v7x's
        # 64 MiB VMEM (and single-buffer the constant-index weight inputs).

        # Generation-aware VMEM budget (~96 MiB on v5e/v6e, ~48 MiB on v7x).
        try:
            vmem_cap = int(pltpu.get_tpu_info().vmem_capacity_bytes)
        except Exception:
            vmem_cap = (64 if "v7" in kind else 128) * 1024 * 1024
        vmem_limit = int(vmem_cap * 3 // 4)

        # f32 softmax on the f32 path and on v5e (no bf16 EUP); bf16 exp on v6e/v7x.
        softmax_dtype = jnp.float32 if (self._f32_compute or is_v5) else self.compute_dtype

        kernel = partial(_mha_fused_kernel, h=self.h, d_k=self.d_k,
                         scale=1.0 / math.sqrt(self.d_k),
                         compute_dtype=self.compute_dtype,
                         softmax_dtype=softmax_dtype,
                         approx_recip=not self._f32_compute)

        return pl.pallas_call(
            kernel,
            out_shape=jax.ShapeDtypeStruct((B, S, D), query.dtype),
            grid=(B, nq),
            in_specs=[
                pl.BlockSpec((1, tq, D), lambda b, i: (b, i, 0)),   # query tile
                pl.BlockSpec((1, S, D), lambda b, i: (b, 0, 0)),    # key rows (once / batch)
                pl.BlockSpec((1, S, D), lambda b, i: (b, 0, 0)),    # value rows (once / batch)
                pl.BlockSpec((1, tq, 1), lambda b, i: (b, i, 0)),   # query-row mask tile
                pl.BlockSpec((3, D, D), lambda b, i: (0, 0, 0)),    # Wq/Wk/Wv (compute dtype)
                pl.BlockSpec((3, 1, D), lambda b, i: (0, 0, 0)),    # bq/bk/bv (f32)
                pl.BlockSpec((D, D), lambda b, i: (0, 0)),          # Wo (compute dtype)
                pl.BlockSpec((1, D), lambda b, i: (0, 0)),          # bo (f32)
            ],
            out_specs=pl.BlockSpec((1, tq, D), lambda b, i: (b, i, 0)),
            scratch_shapes=[pltpu.VMEM((S, D), self.compute_dtype),   # projected K cache
                            pltpu.VMEM((S, D), self.compute_dtype)],  # projected V cache
            compiler_params=pltpu.CompilerParams(
                # B "parallel" (megacore / 2-TC sharding); query-tile axis "arbitrary" so the
                # per-batch K/V projection cache is computed once at i == 0 and reused.
                dimension_semantics=("parallel", "arbitrary"),
                vmem_limit_bytes=vmem_limit),
        )(query, key, value, mask3,
          self.w_qkv_c, self.b_qkv, self.w_out_c, self.b_out)


# --------------------------- Pure-JAX (f32) reference ---------------------------
def reference(mha, q, k, v, mask):
    B, S, D = q.shape
    h, dk = mha.h, mha.d_k

    def lin(x, w, b):
        return x @ w + b

    def split(x):
        return x.reshape(B, S, h, dk).transpose(0, 2, 1, 3)

    Q = split(lin(q, mha.w_qkv[0], mha.b_qkv[0]))
    K = split(lin(k, mha.w_qkv[1], mha.b_qkv[1]))
    V = split(lin(v, mha.w_qkv[2], mha.b_qkv[2]))
    s = jnp.einsum('bhqd,bhkd->bhqk', Q, K) / math.sqrt(dk)
    m = mask[:, None, :, None]            # [B,1,S_q,1]: query-row mask (PyTorch spec semantics)
    s = jnp.where(m == 0, -1e9, s)
    p = jax.nn.softmax(s, axis=-1)
    o = jnp.einsum('bhqk,bhkd->bhqd', p, V)
    o = o.transpose(0, 2, 1, 3).reshape(B, S, D)
    return lin(o, mha.w_out, mha.b_out)


if __name__ == "__main__":
    B, S, H, D_MODEL = 2, 8, 4, 32

    root = jax.random.PRNGKey(0)
    k_param, k_q, k_k, k_v = jax.random.split(root, 4)

    query = jax.random.normal(k_q, (B, S, D_MODEL), jnp.float32)
    key_in = jax.random.normal(k_k, (B, S, D_MODEL), jnp.float32)
    value = jax.random.normal(k_v, (B, S, D_MODEL), jnp.float32)

    # padding mask: zero out the last 2 query rows of batch element 1
    mask = jnp.ones((B, S), jnp.float32).at[1, 6:].set(0.0)

    # f32 MXU path (tight check vs. pure-JAX reference; exact reciprocal, f32 softmax)
    mha_f32 = MultiHeadedAttentionPallas(H, D_MODEL, k_param, dropout=0.1,
                                         compute_dtype=jnp.float32)
    out_f32 = jax.block_until_ready(mha_f32(query, key_in, value, mask))
    ref = reference(mha_f32, query, key_in, value, mask)
    assert out_f32.shape == (B, S, D_MODEL)
    assert jnp.allclose(out_f32, ref, atol=5e-3, rtol=5e-3), \
        f"f32 max err {float(jnp.max(jnp.abs(out_f32 - ref)))}"

    # default bf16-MXU / f32-accumulate path (looser tolerance vs. f32 reference)
    mha_bf16 = MultiHeadedAttentionPallas(H, D_MODEL, k_param, dropout=0.1,
                                          compute_dtype=jnp.bfloat16)
    out_bf16 = jax.block_until_ready(mha_bf16(query, key_in, value, mask))
    assert jnp.allclose(out_bf16, ref, atol=5e-2, rtol=5e-2), \
        f"bf16 max err {float(jnp.max(jnp.abs(out_bf16 - ref)))}"

    print("KERNEL_OK")
</pallas_src>

<mosaic_0001>
module attributes {stable_mosaic.version = 11 : i64} {
  func.func @_mha_fused_kernel(%arg0: i32, %arg1: i32, %arg2: memref<1x8x32xf32, #tpu.memory_space<vmem>>, %arg3: memref<1x8x32xf32, #tpu.memory_space<vmem>>, %arg4: memref<1x8x32xf32, #tpu.memory_space<vmem>>, %arg5: memref<1x8x1xf32, #tpu.memory_space<vmem>>, %arg6: memref<3x32x32xf32, #tpu.memory_space<vmem>>, %arg7: memref<3x1x32xf32, #tpu.memory_space<vmem>>, %arg8: memref<32x32xf32, #tpu.memory_space<vmem>>, %arg9: memref<1x32xf32, #tpu.memory_space<vmem>>, %arg10: memref<1x8x32xf32, #tpu.memory_space<vmem>>, %arg11: memref<8x32xf32, #tpu.memory_space<vmem>>, %arg12: memref<8x32xf32, #tpu.memory_space<vmem>>) attributes {dimension_semantics = [#tpu.dimension_semantics<parallel>, #tpu.dimension_semantics<arbitrary>], iteration_bounds = array<i64: 2, 1>, scalar_prefetch = 0 : i64, scratch_operands = 2 : i64, tpu.core_type = #tpu.core_type<tc>, window_params = [{transform_indices = @transform_0, window_bounds = array<i64: 1, 8, 32>}, {transform_indices = @transform_1, window_bounds = array<i64: 1, 8, 32>}, {transform_indices = @transform_2, window_bounds = array<i64: 1, 8, 32>}, {transform_indices = @transform_3, window_bounds = array<i64: 1, 8, 1>}, {pipeline_mode = #tpu.pipeline_mode<synchronous>, transform_indices = @transform_4, window_bounds = array<i64: 3, 32, 32>}, {pipeline_mode = #tpu.pipeline_mode<synchronous>, transform_indices = @transform_5, window_bounds = array<i64: 3, 1, 32>}, {pipeline_mode = #tpu.pipeline_mode<synchronous>, transform_indices = @transform_6, window_bounds = array<i64: 32, 32>}, {pipeline_mode = #tpu.pipeline_mode<synchronous>, transform_indices = @transform_7, window_bounds = array<i64: 1, 32>}, {transform_indices = @transform_8, window_bounds = array<i64: 1, 8, 32>}]} {
    %c0_i32 = arith.constant 0 : i32
    %0 = arith.cmpi eq, %arg1, %c0_i32 : i32
    %1 = arith.extui %0 : i1 to i32
    %c0_i32_0 = arith.constant 0 : i32
    %2 = arith.cmpi ne, %1, %c0_i32_0 : i32
    scf.if %2 {
      %c0_46 = arith.constant 0 : index
      %c0_47 = arith.constant 0 : index
      %c0_48 = arith.constant 0 : index
      %105 = vector.load %arg3[%c0_46, %c0_47, %c0_48] : memref<1x8x32xf32, #tpu.memory_space<vmem>>, vector<1x8x32xf32>
      %106 = vector.shape_cast %105 : vector<1x8x32xf32> to vector<8x32xf32>
      %c0_49 = arith.constant 0 : index
      %c0_50 = arith.constant 0 : index
      %c0_51 = arith.constant 0 : index
      %107 = vector.load %arg4[%c0_49, %c0_50, %c0_51] : memref<1x8x32xf32, #tpu.memory_space<vmem>>, vector<1x8x32xf32>
      %108 = vector.shape_cast %107 : vector<1x8x32xf32> to vector<8x32xf32>
      %c1 = arith.constant 1 : index
      %c0_52 = arith.constant 0 : index
      %c0_53 = arith.constant 0 : index
      %109 = vector.load %arg6[%c1, %c0_52, %c0_53] : memref<3x32x32xf32, #tpu.memory_space<vmem>>, vector<1x32x32xf32>
      %110 = vector.shape_cast %109 : vector<1x32x32xf32> to vector<32x32xf32>
      %cst_54 = arith.constant dense<0.000000e+00> : vector<8x32xf32>
      %111 = tpu.matmul %106, %110, %cst_54 {dimension_numbers = #tpu.dot_dimension_numbers<[1], [0], [0], [1], [0, 0, 1, 1], [], []>} : vector<8x32xf32>, vector<32x32xf32>, vector<8x32xf32> -> vector<8x32xf32>
      %c1_55 = arith.constant 1 : index
      %c0_56 = arith.constant 0 : index
      %c0_57 = arith.constant 0 : index
      %112 = vector.load %arg7[%c1_55, %c0_56, %c0_57] : memref<3x1x32xf32, #tpu.memory_space<vmem>>, vector<1x1x32xf32>
      %113 = vector.shape_cast %112 : vector<1x1x32xf32> to vector<1x32xf32>
      %114 = vector.broadcast %113 : vector<1x32xf32> to vector<8x32xf32>
      %115 = arith.addf %111, %114 : vector<8x32xf32>
      %c2 = arith.constant 2 : index
      %c0_58 = arith.constant 0 : index
      %c0_59 = arith.constant 0 : index
      %116 = vector.load %arg6[%c2, %c0_58, %c0_59] : memref<3x32x32xf32, #tpu.memory_space<vmem>>, vector<1x32x32xf32>
      %117 = vector.shape_cast %116 : vector<1x32x32xf32> to vector<32x32xf32>
      %cst_60 = arith.constant dense<0.000000e+00> : vector<8x32xf32>
      %118 = tpu.matmul %108, %117, %cst_60 {dimension_numbers = #tpu.dot_dimension_numbers<[1], [0], [0], [1], [0, 0, 1, 1], [], []>} : vector<8x32xf32>, vector<32x32xf32>, vector<8x32xf32> -> vector<8x32xf32>
      %c2_61 = arith.constant 2 : index
      %c0_62 = arith.constant 0 : index
      %c0_63 = arith.constant 0 : index
      %119 = vector.load %arg7[%c2_61, %c0_62, %c0_63] : memref<3x1x32xf32, #tpu.memory_space<vmem>>, vector<1x1x32xf32>
      %120 = vector.shape_cast %119 : vector<1x1x32xf32> to vector<1x32xf32>
      %121 = vector.broadcast %120 : vector<1x32xf32> to vector<8x32xf32>
      %122 = arith.addf %118, %121 : vector<8x32xf32>
      %c0_64 = arith.constant 0 : index
      %c0_65 = arith.constant 0 : index
      %123 = vector.load %arg11[%c0_64, %c0_65] : memref<8x32xf32, #tpu.memory_space<vmem>>, vector<8x32xf32>
      tpu.vector_store %arg11[%c0_64, %c0_65], %115 {strides = array<i32>} : memref<8x32xf32, #tpu.memory_space<vmem>>, vector<8x32xf32>,
      %c0_66 = arith.constant 0 : index
      %c0_67 = arith.constant 0 : index
      %124 = vector.load %arg12[%c0_66, %c0_67] : memref<8x32xf32, #tpu.memory_space<vmem>>, vector<8x32xf32>
      tpu.vector_store %arg12[%c0_66, %c0_67], %122 {strides = array<i32>} : memref<8x32xf32, #tpu.memory_space<vmem>>, vector<8x32xf32>,
    } else {
    }
    %c0 = arith.constant 0 : index
    %c0_1 = arith.constant 0 : index
    %c0_2 = arith.constant 0 : index
    %3 = vector.load %arg2[%c0, %c0_1, %c0_2] : memref<1x8x32xf32, #tpu.memory_space<vmem>>, vector<1x8x32xf32>
    %4 = vector.shape_cast %3 : vector<1x8x32xf32> to vector<8x32xf32>
    %c0_3 = arith.constant 0 : index
    %c0_4 = arith.constant 0 : index
    %c0_5 = arith.constant 0 : index
    %5 = vector.load %arg6[%c0_3, %c0_4, %c0_5] : memref<3x32x32xf32, #tpu.memory_space<vmem>>, vector<1x32x32xf32>
    %6 = vector.shape_cast %5 : vector<1x32x32xf32> to vector<32x32xf32>
    %cst = arith.constant dense<0.000000e+00> : vector<8x32xf32>
    %7 = tpu.matmul %4, %6, %cst {dimension_numbers = #tpu.dot_dimension_numbers<[1], [0], [0], [1], [0, 0, 1, 1], [], []>} : vector<8x32xf32>, vector<32x32xf32>, vector<8x32xf32> -> vector<8x32xf32>
    %c0_6 = arith.constant 0 : index
    %c0_7 = arith.constant 0 : index
    %c0_8 = arith.constant 0 : index
    %8 = vector.load %arg7[%c0_6, %c0_7, %c0_8] : memref<3x1x32xf32, #tpu.memory_space<vmem>>, vector<1x1x32xf32>
    %9 = vector.shape_cast %8 : vector<1x1x32xf32> to vector<1x32xf32>
    %10 = vector.broadcast %9 : vector<1x32xf32> to vector<8x32xf32>
    %11 = arith.addf %7, %10 : vector<8x32xf32>
    %cst_9 = arith.constant 0.353553385 : f32
    %12 = vector.broadcast %cst_9 : f32 to vector<8x32xf32>
    %13 = arith.mulf %11, %12 : vector<8x32xf32>
    %c0_10 = arith.constant 0 : index
    %c0_11 = arith.constant 0 : index
    %14 = vector.load %arg11[%c0_10, %c0_11] : memref<8x32xf32, #tpu.memory_space<vmem>>, vector<8x32xf32>
    %c0_12 = arith.constant 0 : index
    %c0_13 = arith.constant 0 : index
    %15 = vector.load %arg12[%c0_12, %c0_13] : memref<8x32xf32, #tpu.memory_space<vmem>>, vector<8x32xf32>
    %c0_14 = arith.constant 0 : index
    %c0_15 = arith.constant 0 : index
    %c0_16 = arith.constant 0 : index
    %16 = vector.load %arg5[%c0_14, %c0_15, %c0_16] : memref<1x8x1xf32, #tpu.memory_space<vmem>>, vector<1x8x1xf32>
    %17 = vector.shape_cast %16 : vector<1x8x1xf32> to vector<8x1xf32>
    %cst_17 = arith.constant 0.000000e+00 : f32
    %18 = vector.broadcast %cst_17 : f32 to vector<8x1xf32>
    %19 = arith.cmpf oeq, %17, %18 : vector<8x1xf32>
    %20 = vector.extract_strided_slice %13 {offsets = [0, 0], sizes = [8, 8], strides = [1, 1]} : vector<8x32xf32> to vector<8x8xf32>
    %21 = vector.extract_strided_slice %14 {offsets = [0, 0], sizes = [8, 8], strides = [1, 1]} : vector<8x32xf32> to vector<8x8xf32>
    %22 = vector.extract_strided_slice %15 {offsets = [0, 0], sizes = [8, 8], strides = [1, 1]} : vector<8x32xf32> to vector<8x8xf32>
    %cst_18 = arith.constant dense<0.000000e+00> : vector<8x8xf32>
    %23 = tpu.matmul %20, %21, %cst_18 {dimension_numbers = #tpu.dot_dimension_numbers<[1], [1], [0], [0], [0, 0, 1, 0], [], []>} : vector<8x8xf32>, vector<8x8xf32>, vector<8x8xf32> -> vector<8x8xf32>
    %cst_19 = arith.constant -1.000000e+09 : f32
    %24 = vector.shape_cast %19 : vector<8x1xi1> to vector<8x1xi1>
    %25 = vector.broadcast %24 : vector<8x1xi1> to vector<8x8xi1>
    %26 = vector.broadcast %cst_19 : f32 to vector<8x8xf32>
    %27 = arith.select %25, %26, %23 : vector<8x8xi1>, vector<8x8xf32>
    %cst_20 = arith.constant dense<0xFF800000> : vector<8xf32>
    %28 = vector.multi_reduction <maximumf>, %27, %cst_20 [1] : vector<8x8xf32> to vector<8xf32>
    %29 = vector.shape_cast %28 : vector<8xf32> to vector<8x1xf32>
    %30 = vector.broadcast %29 : vector<8x1xf32> to vector<8x8xf32>
    %31 = arith.subf %27, %30 : vector<8x8xf32>
    %32 = math.exp %31 : vector<8x8xf32>
    %cst_21 = arith.constant dense<0.000000e+00> : vector<8xf32>
    %33 = vector.multi_reduction <add>, %32, %cst_21 [1] : vector<8x8xf32> to vector<8xf32>
    %34 = vector.shape_cast %33 : vector<8xf32> to vector<8x1xf32>
    %35 = tpu.reciprocal %34 : vector<8x1xf32> -> vector<8x1xf32>
    %36 = vector.broadcast %35 : vector<8x1xf32> to vector<8x8xf32>
    %37 = arith.mulf %32, %36 : vector<8x8xf32>
    %cst_22 = arith.constant dense<0.000000e+00> : vector<8x8xf32>
    %38 = tpu.matmul %37, %22, %cst_22 {dimension_numbers = #tpu.dot_dimension_numbers<[1], [0], [0], [1], [0, 0, 1, 1], [], []>} : vector<8x8xf32>, vector<8x8xf32>, vector<8x8xf32> -> vector<8x8xf32>
    %39 = vector.extract_strided_slice %13 {offsets = [0, 8], sizes = [8, 8], strides = [1, 1]} : vector<8x32xf32> to vector<8x8xf32>
    %40 = vector.extract_strided_slice %14 {offsets = [0, 8], sizes = [8, 8], strides = [1, 1]} : vector<8x32xf32> to vector<8x8xf32>
    %41 = vector.extract_strided_slice %15 {offsets = [0, 8], sizes = [8, 8], strides = [1, 1]} : vector<8x32xf32> to vector<8x8xf32>
    %cst_23 = arith.constant dense<0.000000e+00> : vector<8x8xf32>
    %42 = tpu.matmul %39, %40, %cst_23 {dimension_numbers = #tpu.dot_dimension_numbers<[1], [1], [0], [0], [0, 0, 1, 0], [], []>} : vector<8x8xf32>, vector<8x8xf32>, vector<8x8xf32> -> vector<8x8xf32>
    %cst_24 = arith.constant -1.000000e+09 : f32
    %43 = vector.shape_cast %19 : vector<8x1xi1> to vector<8x1xi1>
    %44 = vector.broadcast %43 : vector<8x1xi1> to vector<8x8xi1>
    %45 = vector.broadcast %cst_24 : f32 to vector<8x8xf32>
    %46 = arith.select %44, %45, %42 : vector<8x8xi1>, vector<8x8xf32>
    %cst_25 = arith.constant dense<0xFF800000> : vector<8xf32>
    %47 = vector.multi_reduction <maximumf>, %46, %cst_25 [1] : vector<8x8xf32> to vector<8xf32>
    %48 = vector.shape_cast %47 : vector<8xf32> to vector<8x1xf32>
    %49 = vector.broadcast %48 : vector<8x1xf32> to vector<8x8xf32>
    %50 = arith.subf %46, %49 : vector<8x8xf32>
    %51 = math.exp %50 : vector<8x8xf32>
    %cst_26 = arith.constant dense<0.000000e+00> : vector<8xf32>
    %52 = vector.multi_reduction <add>, %51, %cst_26 [1] : vector<8x8xf32> to vector<8xf32>
    %53 = vector.shape_cast %52 : vector<8xf32> to vector<8x1xf32>
    %54 = tpu.reciprocal %53 : vector<8x1xf32> -> vector<8x1xf32>
    %55 = vector.broadcast %54 : vector<8x1xf32> to vector<8x8xf32>
    %56 = arith.mulf %51, %55 : vector<8x8xf32>
    %cst_27 = arith.constant dense<0.000000e+00> : vector<8x8xf32>
    %57 = tpu.matmul %56, %41, %cst_27 {dimension_numbers = #tpu.dot_dimension_numbers<[1], [0], [0], [1], [0, 0, 1, 1], [], []>} : vector<8x8xf32>, vector<8x8xf32>, vector<8x8xf32> -> vector<8x8xf32>
    %58 = vector.extract_strided_slice %13 {offsets = [0, 16], sizes = [8, 8], strides = [1, 1]} : vector<8x32xf32> to vector<8x8xf32>
    %59 = vector.extract_strided_slice %14 {offsets = [0, 16], sizes = [8, 8], strides = [1, 1]} : vector<8x32xf32> to vector<8x8xf32>
    %60 = vector.extract_strided_slice %15 {offsets = [0, 16], sizes = [8, 8], strides = [1, 1]} : vector<8x32xf32> to vector<8x8xf32>
    %cst_28 = arith.constant dense<0.000000e+00> : vector<8x8xf32>
    %61 = tpu.matmul %58, %59, %cst_28 {dimension_numbers = #tpu.dot_dimension_numbers<[1], [1], [0], [0], [0, 0, 1, 0], [], []>} : vector<8x8xf32>, vector<8x8xf32>, vector<8x8xf32> -> vector<8x8xf32>
    %cst_29 = arith.constant -1.000000e+09 : f32
    %62 = vector.shape_cast %19 : vector<8x1xi1> to vector<8x1xi1>
    %63 = vector.broadcast %62 : vector<8x1xi1> to vector<8x8xi1>
    %64 = vector.broadcast %cst_29 : f32 to vector<8x8xf32>
    %65 = arith.select %63, %64, %61 : vector<8x8xi1>, vector<8x8xf32>
    %cst_30 = arith.constant dense<0xFF800000> : vector<8xf32>
    %66 = vector.multi_reduction <maximumf>, %65, %cst_30 [1] : vector<8x8xf32> to vector<8xf32>
    %67 = vector.shape_cast %66 : vector<8xf32> to vector<8x1xf32>
    %68 = vector.broadcast %67 : vector<8x1xf32> to vector<8x8xf32>
    %69 = arith.subf %65, %68 : vector<8x8xf32>
    %70 = math.exp %69 : vector<8x8xf32>
    %cst_31 = arith.constant dense<0.000000e+00> : vector<8xf32>
    %71 = vector.multi_reduction <add>, %70, %cst_31 [1] : vector<8x8xf32> to vector<8xf32>
    %72 = vector.shape_cast %71 : vector<8xf32> to vector<8x1xf32>
    %73 = tpu.reciprocal %72 : vector<8x1xf32> -> vector<8x1xf32>
    %74 = vector.broadcast %73 : vector<8x1xf32> to vector<8x8xf32>
    %75 = arith.mulf %70, %74 : vector<8x8xf32>
    %cst_32 = arith.constant dense<0.000000e+00> : vector<8x8xf32>
    %76 = tpu.matmul %75, %60, %cst_32 {dimension_numbers = #tpu.dot_dimension_numbers<[1], [0], [0], [1], [0, 0, 1, 1], [], []>} : vector<8x8xf32>, vector<8x8xf32>, vector<8x8xf32> -> vector<8x8xf32>
    %77 = vector.extract_strided_slice %13 {offsets = [0, 24], sizes = [8, 8], strides = [1, 1]} : vector<8x32xf32> to vector<8x8xf32>
    %78 = vector.extract_strided_slice %14 {offsets = [0, 24], sizes = [8, 8], strides = [1, 1]} : vector<8x32xf32> to vector<8x8xf32>
    %79 = vector.extract_strided_slice %15 {offsets = [0, 24], sizes = [8, 8], strides = [1, 1]} : vector<8x32xf32> to vector<8x8xf32>
    %cst_33 = arith.constant dense<0.000000e+00> : vector<8x8xf32>
    %80 = tpu.matmul %77, %78, %cst_33 {dimension_numbers = #tpu.dot_dimension_numbers<[1], [1], [0], [0], [0, 0, 1, 0], [], []>} : vector<8x8xf32>, vector<8x8xf32>, vector<8x8xf32> -> vector<8x8xf32>
    %cst_34 = arith.constant -1.000000e+09 : f32
    %81 = vector.shape_cast %19 : vector<8x1xi1> to vector<8x1xi1>
    %82 = vector.broadcast %81 : vector<8x1xi1> to vector<8x8xi1>
    %83 = vector.broadcast %cst_34 : f32 to vector<8x8xf32>
    %84 = arith.select %82, %83, %80 : vector<8x8xi1>, vector<8x8xf32>
    %cst_35 = arith.constant dense<0xFF800000> : vector<8xf32>
    %85 = vector.multi_reduction <maximumf>, %84, %cst_35 [1] : vector<8x8xf32> to vector<8xf32>
    %86 = vector.shape_cast %85 : vector<8xf32> to vector<8x1xf32>
    %87 = vector.broadcast %86 : vector<8x1xf32> to vector<8x8xf32>
    %88 = arith.subf %84, %87 : vector<8x8xf32>
    %89 = math.exp %88 : vector<8x8xf32>
    %cst_36 = arith.constant dense<0.000000e+00> : vector<8xf32>
    %90 = vector.multi_reduction <add>, %89, %cst_36 [1] : vector<8x8xf32> to vector<8xf32>
    %91 = vector.shape_cast %90 : vector<8xf32> to vector<8x1xf32>
    %92 = tpu.reciprocal %91 : vector<8x1xf32> -> vector<8x1xf32>
    %93 = vector.broadcast %92 : vector<8x1xf32> to vector<8x8xf32>
    %94 = arith.mulf %89, %93 : vector<8x8xf32>
    %cst_37 = arith.constant dense<0.000000e+00> : vector<8x8xf32>
    %95 = tpu.matmul %94, %79, %cst_37 {dimension_numbers = #tpu.dot_dimension_numbers<[1], [0], [0], [1], [0, 0, 1, 1], [], []>} : vector<8x8xf32>, vector<8x8xf32>, vector<8x8xf32> -> vector<8x8xf32>
    %96 = tpu.concatenate %38, %57, %76, %95 in 1 : vector<8x8xf32>, vector<8x8xf32>, vector<8x8xf32>, vector<8x8xf32> -> vector<8x32xf32>
    %c0_38 = arith.constant 0 : index
    %c0_39 = arith.constant 0 : index
    %97 = vector.load %arg8[%c0_38, %c0_39] : memref<32x32xf32, #tpu.memory_space<vmem>>, vector<32x32xf32>
    %cst_40 = arith.constant dense<0.000000e+00> : vector<8x32xf32>
    %98 = tpu.matmul %96, %97, %cst_40 {dimension_numbers = #tpu.dot_dimension_numbers<[1], [0], [0], [1], [0, 0, 1, 1], [], []>} : vector<8x32xf32>, vector<32x32xf32>, vector<8x32xf32> -> vector<8x32xf32>
    %c0_41 = arith.constant 0 : index
    %c0_42 = arith.constant 0 : index
    %99 = vector.load %arg9[%c0_41, %c0_42] : memref<1x32xf32, #tpu.memory_space<vmem>>, vector<1x32xf32>
    %100 = vector.broadcast %99 : vector<1x32xf32> to vector<8x32xf32>
    %101 = arith.addf %98, %100 : vector<8x32xf32>
    %c0_43 = arith.constant 0 : index
    %c0_44 = arith.constant 0 : index
    %c0_45 = arith.constant 0 : index
    %102 = vector.load %arg10[%c0_43, %c0_44, %c0_45] : memref<1x8x32xf32, #tpu.memory_space<vmem>>, vector<1x8x32xf32>
    %103 = vector.shape_cast %102 : vector<1x8x32xf32> to vector<8x32xf32>
    %104 = vector.shape_cast %101 : vector<8x32xf32> to vector<1x8x32xf32>
    tpu.vector_store %arg10[%c0_43, %c0_44, %c0_45], %104 {strides = array<i32>} : memref<1x8x32xf32, #tpu.memory_space<vmem>>, vector<1x8x32xf32>,
    return
  }
  func.func @transform_0(%arg0: i32, %arg1: i32) -> (i32, i32, i32) {
    %c0_i32 = arith.constant 0 : i32
    %c0_i32_0 = arith.constant 0 : i32
    return %arg0, %arg1, %c0_i32 : i32, i32, i32
  }
  func.func @transform_1(%arg0: i32, %arg1: i32) -> (i32, i32, i32) {
    %c0_i32 = arith.constant 0 : i32
    %c0_i32_0 = arith.constant 0 : i32
    %c0_i32_1 = arith.constant 0 : i32
    return %arg0, %c0_i32, %c0_i32_0 : i32, i32, i32
  }
  func.func @transform_2(%arg0: i32, %arg1: i32) -> (i32, i32, i32) {
    %c0_i32 = arith.constant 0 : i32
    %c0_i32_0 = arith.constant 0 : i32
    %c0_i32_1 = arith.constant 0 : i32
    return %arg0, %c0_i32, %c0_i32_0 : i32, i32, i32
  }
  func.func @transform_3(%arg0: i32, %arg1: i32) -> (i32, i32, i32) {
    %c0_i32 = arith.constant 0 : i32
    %c0_i32_0 = arith.constant 0 : i32
    return %arg0, %arg1, %c0_i32 : i32, i32, i32
  }
  func.func @transform_4(%arg0: i32, %arg1: i32) -> (i32, i32, i32) {
    %c0_i32 = arith.constant 0 : i32
    %c0_i32_0 = arith.constant 0 : i32
    %c0_i32_1 = arith.constant 0 : i32
    %c0_i32_2 = arith.constant 0 : i32
    return %c0_i32, %c0_i32_0, %c0_i32_1 : i32, i32, i32
  }
  func.func @transform_5(%arg0: i32, %arg1: i32) -> (i32, i32, i32) {
    %c0_i32 = arith.constant 0 : i32
    %c0_i32_0 = arith.constant 0 : i32
    %c0_i32_1 = arith.constant 0 : i32
    %c0_i32_2 = arith.constant 0 : i32
    return %c0_i32, %c0_i32_0, %c0_i32_1 : i32, i32, i32
  }
  func.func @transform_6(%arg0: i32, %arg1: i32) -> (i32, i32) {
    %c0_i32 = arith.constant 0 : i32
    %c0_i32_0 = arith.constant 0 : i32
    %c0_i32_1 = arith.constant 0 : i32
    return %c0_i32, %c0_i32_0 : i32, i32
  }
  func.func @transform_7(%arg0: i32, %arg1: i32) -> (i32, i32) {
    %c0_i32 = arith.constant 0 : i32
    %c0_i32_0 = arith.constant 0 : i32
    %c0_i32_1 = arith.constant 0 : i32
    return %c0_i32, %c0_i32_0 : i32, i32
  }
  func.func @transform_8(%arg0: i32, %arg1: i32) -> (i32, i32, i32) {
    %c0_i32 = arith.constant 0 : i32
    %c0_i32_0 = arith.constant 0 : i32
    return %arg0, %arg1, %c0_i32 : i32, i32, i32
  }
}

</mosaic_0001>

<bundles_post_ra>
// kernel: tpu_custom_call.1
= control target key start
LH: loop header
LB: loop body
LE: loop exit
PB: predicated region body
PF: predicated region fallthrough
CT: control target
= control target key end

     0   :  { %s3002_s0 = inlined_call_operand.hbm [shape: f32[2,8,32], index: 0, kind: input, shape index: {}]   ;;  %s3003_s1 = inlined_call_operand.hbm [shape: f32[2,8,32], index: 1, kind: input, shape index: {}]   ;;  %s3004_s2 = inlined_call_operand.hbm [shape: f32[2,8,32], index: 2, kind: input, shape index: {}]   ;;  %s3005_s3 = inlined_call_operand.hbm [shape: f32[2,8,1], index: 3, kind: input, shape index: {}]   ;;  %s3006_s4 = inlined_call_operand.hbm [shape: f32[3,32,32], index: 4, kind: input, shape index: {}]   ;;  %s3007_s5 = inlined_call_operand.hbm [shape: f32[3,1,32], index: 5, kind: input, shape index: {}]   ;;  %s3008_s6 = inlined_call_operand.hbm [shape: f32[32,32], index: 6, kind: input, shape index: {}]   ;;  %s3009_s7 = inlined_call_operand.hbm [shape: f32[1,32], index: 7, kind: input, shape index: {}]   ;;  %s3010_s8 = inlined_call_operand.hbm [shape: f32[2,8,32], index: 8, kind: output, shape index: {}]  }
   0x1   :  { %3032 = sst [smem:[#allocation33_spill]] %s3003_s1 }
   0x2   :  { %3033 = sst [smem:[#allocation34_spill]] %s3006_s4 }
   0x3   :  { %3034 = sst [smem:[#allocation35_spill]] %s3007_s5 }
   0x4   :  { %3035 = sst [smem:[#allocation36_spill]] %s3010_s8 }
   0x5   :  { %13 = vsyncpa [#allocation5], 0 }
   0x6   :  { %15 = vsyncpa [#allocation5 + $0x1], 0 }
   0x7   :  { %16 = vsyncpa [#allocation8], 0 }
   0x8   :  { %18 = vsyncpa [#allocation8 + $0x1], 0 }
   0x9   :  { %19 = vsyncpa [#allocation11], 0 }
   0xa   :  { %21 = vsyncpa [#allocation11 + $0x1], 0 }
   0xb   :  { %22 = vsyncpa [#allocation14], 0 }
   0xc   :  { %23 = vsyncpa [#allocation17], 0 }
   0xd   :  { %24 = vsyncpa [#allocation6], 0 }
   0xe   :  { %26 = vsyncpa [#allocation6 + $0x1], 0  ;;  %s2492_s27 = smov 0   ;;  %s2494_s28 = smov 0  }
   0xf   :  { %s2496_s29 = smov 0   ;;  %s2498_s30 = smov 0  }
  0x10   :  { %s2500_s9 = smov 0   ;;  %s2502_s10 = smov 0  }
  0x11 LB: > { %3036 = sst [smem:[#allocation26_spill]] %s2402_s27  ;;  %s2523_s11 = sadd.s32 4294967295, %s2422_s10   ;;  %s2422_s10 = sphi %s2502_s10, %s32_s10   ;;  %s2418_s9 = sphi %s2500_s9, %s3082_s9   ;;  %s2414_s30 = sphi %s2498_s30, %s3081_s30   ;;  %s2410_s29 = sphi %s2496_s29, %s3085_s29   ;;  %s2406_s28 = sphi %s2494_s28, %s3084_s28   ;;  %s2402_s27 = sphi %s2492_s27, %s3083_s27  }
  0x12   : > { %3037 = sst [smem:[#allocation27_spill]] %s2414_s30  ;;  %s1746_s12 = sadd.s32 4294967294, %s2422_s10  }
  0x13   : > { %3038 = sst [smem:[#allocation28_spill]] %s2418_s9  ;;  %p66_p0 = scmp.ne.s32.totalorder %s2406_s28, %s2402_s27 }
  0x14   : > { %p3011_p1 = scmp.eq.s32.totalorder %s2523_s11, 0  ;;  %p262_p3 = scmp.eq.s32.totalorder %s1746_s12, 1 }
  0x15   : > { %p1747_p5 = scmp.ge.s32.totalorder %s2422_s10, 1  ;;  %p269_p7 = scmp.lt.s32.totalorder %s2422_s10, 3 }
  0x16   : > { %p2532_p4 = por %p3011_p1, %p66_p0  ;;  %p2537_p6 = por %p262_p3, %p66_p0 }
  0x17   : > { %p2542_p8 = pnand %p1747_p5, %p269_p7  ;;  %s2424_s16 = smov [#allocation12]  }
  0x18   : > { %s3039_s13 = scalar_select %p2532_p4, 1, 0 }
  0x19   : > { %s3040_s14 = scalar_select %p2537_p6, 1, 0 }
  0x1a   : > { %s3042_s15 = scalar_select %p2542_p8, 1, 0 }
  0x1b   : > { %3041 = sst [smem:[#allocation29_spill]] %s3040_s14  ;;  %s281_s17 = sshll.u32 %s2424_s16, 4  ;;  %s2546_s17 = int_to_ptr.vmem [resolvable:$true] %s281_s17 }
  0x1c   : > { %p1965_p9 = pneg %p2542_p8  ;;  %s2425_s19 = smov [#allocation13]  }
  0x1d   : > { %s294_s20 = sshll.u32 %s2425_s19, 4  ;;  %s3044_s4 = sld [smem:[#allocation34_spill]]  ;;  %s2557_s20 = int_to_ptr.vmem [resolvable:$true] %s294_s20 }
  0x1e   : > { %p2553_p11 = pnand %p1965_p9, %p3011_p1 }
  0x20   : > { %s3043_s18 = scalar_select %p2553_p11, 1, 0 }
  0x21   : > { %p2567_p13 = pneg %p2553_p11 }
  0x23   : > { %s2088_s23 = scalar_lea.hbm %s3044_s4, 1536 }
  0x24   : > { %p2089_p12 = scmp.ne.s32.totalorder %s3044_s4, %s2088_s23  ;;  %p2095_p5 = scmp.lt.u32.totalorder %s2088_s23, %s3044_s4 }
  0x25   : > { %s3045_s26 = scalar_select %p2567_p13, 1, 0 }
  0x26   : > { %p2091_p0 = pnand %p2567_p13, %p2089_p12 }
  0x28   : > { %p2092_p3 = pneg %p2091_p0 }
  0x2a   : > { %p2097_p7 = pnand %p2095_p5, %p2092_p3 }
  0x2c   : > { %2100 = shalt.err (!%p2097_p7)
}
  0x2d   : > { %s2101_s19 = scalar_lea.vmem %s2546_s17, 1536  ;;  %p2109_p2 = scmp.lt.s32.totalorder %s2546_s17, %s2546_s17 }
  0x2e   : > { %p2102_p9 = scmp.ne.s32.totalorder %s2546_s17, %s2101_s19  ;;  %p2110_p6 = scmp.lt.s32.totalorder %s2101_s19, %s2101_s19 }
  0x30   : > { %p2104_p10 = pnand %p2102_p9, %p2567_p13  ;;  %p2111_p12 = por %p2110_p6, %p2109_p2 }
  0x32   : > { %p2105_p1 = pneg %p2104_p10 }
  0x34   : > { %p2112_p0 = pnand %p2111_p12, %p2105_p1 }
  0x36   : > { %2115 = shalt.err (!%p2112_p0)
}
  0x37   : > { %s3015_s21 = smov 128   ;;  %s3016_s22 = smov 8  }
  0x38   : > { %1968 = dma.hbm_to_vmem [thread:$0]  (!%p2553_p11), %s3044_s4, 1536, %s2546_s17, [#allocation11], %s3015_s21, %s3015_s21, %s3016_s22  }
  0x39   : > { %s3046_s5 = sld [smem:[#allocation35_spill]] }
  0x3f   : > { %s2116_s16 = scalar_lea.hbm %s3046_s5, 48 }
  0x40   : > { %p2117_p1 = scmp.ne.s32.totalorder %s3046_s5, %s2116_s16  ;;  %p2123_p10 = scmp.lt.u32.totalorder %s2116_s16, %s3046_s5 }
  0x42   : > { %p2119_p2 = pnand %p2117_p1, %p2567_p13 }
  0x44   : > { %p2120_p6 = pneg %p2119_p2 }
  0x46   : > { %p2125_p3 = pnand %p2123_p10, %p2120_p6 }
  0x48   : > { %2128 = shalt.err (!%p2125_p3)
}
  0x49   : > { %s2129_s17 = scalar_lea.vmem %s2557_s20, 48  ;;  %s2136_s14 = scalar_lea.vmem %s2557_s20, 64 }
  0x4a   : > { %p2130_p5 = scmp.ne.s32.totalorder %s2557_s20, %s2129_s17  ;;  %p2137_p12 = scmp.lt.s32.totalorder %s2557_s20, %s2557_s20 }
  0x4b   : > { %p2138_p0 = scmp.lt.s32.totalorder %s2136_s14, %s2129_s17 }
  0x4c   : > { %p2132_p7 = pnand %p2130_p5, %p2567_p13 }
  0x4d   : > { %p2139_p1 = por %p2138_p0, %p2137_p12 }
  0x4e   : > { %p2133_p9 = pneg %p2132_p7 }
  0x50   : > { %p2140_p2 = pnand %p2139_p1, %p2133_p9 }
  0x52   : > { %2143 = shalt.err (!%p2140_p2)
}
  0x53   : > { %s2428_s8 = smov 16   ;;  %s2429_s27 = smov 1  }
  0x54   : > { %1971 = dma.hbm_to_vmem [thread:$0]  (!%p2553_p11), %s3046_s5, 48, %s2557_s20, [#allocation14], %s2428_s8, %s2428_s8, %s2429_s27  }
  0x55   : > { %s44_s25 = sadd.s32 1, %s2418_s9  ;;  %s53_s12 = sadd.s32 1, %s2410_s29 }
  0x56   : > { %p46_p6 = scmp.ge.s32.totalorder %s44_s25, 2  ;;  %p60_p10 = scmp.ne.s32.totalorder %s2410_s29, %s2406_s28 }
  0x57   : > { %p61_p3 = scmp.eq.s32.totalorder %s2422_s10, 0  ;;  %p1999_p5 = scmp.lt.s32.totalorder %s2422_s10, 2 }
  0x58   : > { %s3087_s25 = smov (%p46_p6, %s44_s25), 0  ;;  %p3048_p9 = scmp.eq.s32.totalorder %s2523_s11, 1 }
  0x59   : > { %3047 = sst [smem:[#allocation30_spill]] %s3087_s25  ;;  %p62_p7 = por %p61_p3, %p60_p10 }
  0x5a   : > { %p2625_p12 = por %p3048_p9, %p60_p10  ;;  %s48_s19 = ssub.s32 %s2418_s9, %s3087_s25 }
  0x5b   : > { %s3017_s20 = sand.u32 1, %s2410_s29   ;;  %p51_p0 = scmp.eq.s32.totalorder %s48_s19, 0 }
  0x5c   : > { %s3049_s16 = scalar_select %p2625_p12, 1, 0 }
  0x5d   : > { %s2634_s17 = sshll.u32 %s3017_s20, 3  ;;  %s2637_s14 = sshll.u32 %s2418_s9, 7 }
  0x5e   : > { %3050 = sst [smem:[#allocation31_spill]] %s3049_s16  ;;  %p2639_p1 = pnand %p1999_p5, %p62_p7 }
  0x5f   : > { %s2644_s27 = scalar_select %p51_p0, %s2410_s29, %s53_s12  }
  0x60   : > { %s3051_s8 = scalar_select %p2639_p1, 1, 0 }
  0x61   : > { %3052 = sst [smem:[#allocation32_spill]] %s2644_s27  ;;  %s3022_s23 = sand.u32 1, %s2422_s10  }
  0x62   : > { %s3053_s1 = sld [smem:[#allocation33_spill]]  ;;  %s355_s19 = scalar_lea.vmem [#allocation7], %s2634_s17 }
  0x63   : > { %s362_s20 = sshll.u32 %s355_s19, 4  ;;  %s2658_s4 = scalar_lea.sflag [#allocation8], %s3022_s23  ;;  %s2654_s20 = int_to_ptr.vmem [resolvable:$true] %s362_s20 }
  0x64   : > { %p2664_p6 = pneg %p2639_p1 }
  0x68   : > { %s2651_s22 = scalar_lea.hbm %s3053_s1, %s2637_s14  ;;  %s2149_s19 = scalar_lea.hbm %s3053_s1, 256 }
  0x69   : > { %s2144_s5 = scalar_lea.hbm %s2651_s22, 128  ;;  %p2150_p5 = scmp.lt.u32.totalorder %s2651_s22, %s3053_s1 }
  0x6a   : > { %p2145_p2 = scmp.ne.s32.totalorder %s2651_s22, %s2144_s5  ;;  %p2151_p7 = scmp.lt.u32.totalorder %s2149_s19, %s2144_s5 }
  0x6b   : > { %p2153_p0 = scmp.lt.u32.totalorder %s2144_s5, %s2651_s22 }
  0x6c   : > { %p2147_p10 = pnand %p2664_p6, %p2145_p2  ;;  %p2152_p9 = por %p2151_p7, %p2150_p5 }
  0x6e   : > { %p2148_p3 = pneg %p2147_p10  ;;  %p2154_p12 = por %p2153_p0, %p2152_p9 }
  0x70   : > { %p2155_p4 = pnand %p2154_p12, %p2148_p3 }
  0x72   : > { %2158 = shalt.err (!%p2155_p4)
}
  0x73   : > { %s2159_s23 = scalar_lea.vmem %s2654_s20, 128  ;;  %s2430_s21 = smov [#allocation7]  }
  0x74   : > { %p2160_p2 = scmp.ne.s32.totalorder %s2654_s20, %s2159_s23  ;;  %s2164_s24 = sshll.u32 %s2430_s21, 4  ;;  %s2165_s24 = int_to_ptr.vmem [resolvable:$false] %s2164_s24 }
  0x75   : > { %s2166_s9 = scalar_lea.vmem %s2165_s24, 256  ;;  %p2167_p11 = scmp.lt.s32.totalorder %s2654_s20, %s2165_s24 }
  0x76   : > { %p2162_p10 = pnand %p2160_p2, %p2664_p6  ;;  %p2168_p13 = scmp.lt.s32.totalorder %s2166_s9, %s2159_s23 }
  0x78   : > { %p2163_p8 = pneg %p2162_p10  ;;  %p2169_p5 = por %p2168_p13, %p2167_p11 }
  0x7a   : > { %p2170_p7 = pnand %p2169_p5, %p2163_p8 }
  0x7c   : > { %2173 = shalt.err (!%p2170_p7)
}
  0x7d   : > { %1984 = dma.hbm_to_vmem [thread:$0]  (!%p2639_p1), %s2651_s22, 128, %s2654_s20, %s2658_s4  }
  0x7e   : > { %s2431_s5 = smov [#allocation15]   ;;  %s2432_s19 = smov [#allocation16]  }
  0x7f   : > { %s307_s25 = sshll.u32 %s2431_s5, 4  ;;  %s321_s1 = sshll.u32 %s2432_s19, 4  ;;  %s308_s25 = int_to_ptr.vmem [resolvable:$true] %s307_s25  ;;  %s2688_s1 = int_to_ptr.vmem [resolvable:$true] %s321_s1 }
  0x80   : > { %s2174_s23 = scalar_lea.hbm %s3008_s6, 512  ;;  %p3055_p8 = scmp.ne.s32.totalorder %s3045_s26, 0 }
  0x81   : > { %p2175_p4 = scmp.ne.s32.totalorder %s3008_s6, %s2174_s23  ;;  %p2181_p12 = scmp.lt.u32.totalorder %s2174_s23, %s3008_s6 }
  0x83   : > { %p2177_p11 = pnand %p2175_p4, %p3055_p8 }
  0x85   : > { %p2178_p13 = pneg %p2177_p11 }
  0x87   : > { %p2183_p3 = pnand %p2181_p12, %p2178_p13 }
  0x89   : > { %2186 = shalt.err (!%p2183_p3)
}
  0x8a   : > { %s2187_s20 = scalar_lea.vmem %s308_s25, 512  ;;  %p2195_p10 = scmp.lt.s32.totalorder %s308_s25, %s308_s25 }
  0x8b   : > { %p2188_p9 = scmp.ne.s32.totalorder %s308_s25, %s2187_s20  ;;  %p2196_p5 = scmp.lt.s32.totalorder %s2187_s20, %s2187_s20 }
  0x8d   : > { %p2190_p0 = pnand %p2188_p9, %p3055_p8  ;;  %p2197_p7 = por %p2196_p5, %p2195_p10 }
  0x8f   : > { %p2191_p2 = pneg %p2190_p0 }
  0x91   : > { %p2198_p1 = pnand %p2197_p7, %p2191_p2 }
  0x93   : > { %2201 = shalt.err (!%p2198_p1)
}
  0x94   : > { %p3056_p4 = scmp.ne.s32.totalorder %s3043_s18, 0  ;;  %s3057_s27 = smov 8  }
  0x95   : > { %s3058_s5 = smov 128   ;;  %s2202_s23 = scalar_lea.hbm %s3009_s7, 16 }
  0x96   : > { %1974 = dma.hbm_to_vmem [thread:$0]  (!%p3056_p4), %s3008_s6, 512, %s308_s25, [#allocation14], %s3058_s5, %s3058_s5, %s3057_s27  }
  0x97   : > { %p2203_p11 = scmp.ne.s32.totalorder %s3009_s7, %s2202_s23  ;;  %p2209_p12 = scmp.lt.u32.totalorder %s2202_s23, %s3009_s7 }
  0x99   : > { %p2205_p1 = pnand %p2203_p11, %p3055_p8 }
  0x9b   : > { %p2206_p13 = pneg %p2205_p1 }
  0x9d   : > { %p2211_p3 = pnand %p2209_p12, %p2206_p13 }
  0x9f   : > { %2214 = shalt.err (!%p2211_p3)
}
  0xa0   : > { %s2215_s25 = scalar_lea.vmem %s2688_s1, 16  ;;  %s2222_s27 = scalar_lea.vmem %s2688_s1, 32 }
  0xa1   : > { %p2216_p9 = scmp.ne.s32.totalorder %s2688_s1, %s2215_s25  ;;  %p2223_p10 = scmp.lt.s32.totalorder %s2688_s1, %s2688_s1 }
  0xa2   : > { %p2224_p5 = scmp.lt.s32.totalorder %s2222_s27, %s2215_s25 }
  0xa3   : > { %p2218_p0 = pnand %p2216_p9, %p3055_p8 }
  0xa4   : > { %p2225_p7 = por %p2224_p5, %p2223_p10 }
  0xa5   : > { %p2219_p2 = pneg %p2218_p0 }
  0xa7   : > { %p2226_p11 = pnand %p2225_p7, %p2219_p2 }
  0xa9   : > { %2229 = shalt.err (!%p2226_p11)
}
  0xaa   : > { %1977 = dma.hbm_to_vmem [thread:$0]  (!%p3056_p4), %s3009_s7, 16, %s2688_s1, [#allocation17]  }
  0xab   : > { %s2739_s19 = scalar_lea.hbm %s3002_s0, %s2637_s14  ;;  %s336_s21 = scalar_lea.vmem [#allocation4], %s2634_s17 }
  0xac   : > { %s344_s18 = sshll.u32 %s336_s21, 4  ;;  %s3059_s24 = sand.u32 1, %s2410_s29   ;;  %s345_s18 = int_to_ptr.vmem [resolvable:$true] %s344_s18 }
  0xad   : > { %s333_s23 = scalar_lea.sflag [#allocation5], %s3059_s24  ;;  %s2230_s9 = scalar_lea.hbm %s2739_s19, 128 }
  0xae   : > { %p2231_p8 = scmp.ne.s32.totalorder %s2739_s19, %s2230_s9  ;;  %s2235_s20 = scalar_lea.hbm %s3002_s0, 256 }
  0xaf   : > { %p2236_p4 = scmp.lt.u32.totalorder %s2739_s19, %s3002_s0  ;;  %p2237_p12 = scmp.lt.u32.totalorder %s2235_s20, %s2230_s9 }
  0xb0   : > { %p2233_p1 = pnand %p2231_p8, %p2664_p6  ;;  %p2239_p9 = scmp.lt.u32.totalorder %s2230_s9, %s2739_s19 }
  0xb1   : > { %p2238_p3 = por %p2237_p12, %p2236_p4 }
  0xb2   : > { %p2234_p13 = pneg %p2233_p1 }
  0xb3   : > { %p2240_p0 = por %p2239_p9, %p2238_p3 }
  0xb5   : > { %p2241_p2 = pnand %p2240_p0, %p2234_p13 }
  0xb7   : > { %2244 = shalt.err (!%p2241_p2)
}
  0xb8   : > { %s2245_s30 = scalar_lea.vmem %s345_s18, 128  ;;  %s2433_s5 = smov [#allocation4]  }
  0xb9   : > { %p2246_p10 = scmp.ne.s32.totalorder %s345_s18, %s2245_s30  ;;  %s2250_s26 = sshll.u32 %s2433_s5, 4  ;;  %s2251_s26 = int_to_ptr.vmem [resolvable:$false] %s2250_s26 }
  0xba   : > { %s2252_s16 = scalar_lea.vmem %s2251_s26, 256  ;;  %p2253_p11 = scmp.lt.s32.totalorder %s345_s18, %s2251_s26 }
  0xbb   : > { %p2248_p5 = pnand %p2246_p10, %p2664_p6  ;;  %p2254_p8 = scmp.lt.s32.totalorder %s2252_s16, %s2245_s30 }
  0xbd   : > { %p2249_p7 = pneg %p2248_p5  ;;  %p2255_p1 = por %p2254_p8, %p2253_p11 }
  0xbf   : > { %p2256_p4 = pnand %p2255_p1, %p2249_p7 }
  0xc1   : > { %2259 = shalt.err (!%p2256_p4)
}
  0xc2   : > { %p3060_p12 = scmp.ne.s32.totalorder %s3051_s8, 0  ;;  %s2765_s9 = scalar_lea.hbm %s3004_s2, %s2637_s14 }
  0xc3   : > { %s373_s1 = scalar_lea.vmem [#allocation9], %s2634_s17  ;;  %s2260_s20 = scalar_lea.hbm %s2765_s9, 128 }
  0xc4   : > { %1981 = dma.hbm_to_vmem [thread:$0]  (!%p3060_p12), %s2739_s19, 128, %s345_s18, %s333_s23  }
  0xc5   : > { %s380_s22 = sshll.u32 %s373_s1, 4  ;;  %p2261_p13 = scmp.ne.s32.totalorder %s2765_s9, %s2260_s20  ;;  %s381_s22 = int_to_ptr.vmem [resolvable:$true] %s380_s22 }
  0xc6   : > { %s2265_s19 = scalar_lea.hbm %s3004_s2, 256  ;;  %p2266_p0 = scmp.lt.u32.totalorder %s2765_s9, %s3004_s2 }
  0xc7   : > { %p2263_p3 = pnand %p2261_p13, %p2664_p6  ;;  %p2267_p2 = scmp.lt.u32.totalorder %s2265_s19, %s2260_s20 }
  0xc8   : > { %p2269_p5 = scmp.lt.u32.totalorder %s2260_s20, %s2765_s9 }
  0xc9   : > { %p2264_p9 = pneg %p2263_p3  ;;  %p2268_p10 = por %p2267_p2, %p2266_p0 }
  0xcb   : > { %p2270_p7 = por %p2269_p5, %p2268_p10 }
  0xcd   : > { %p2271_p11 = pnand %p2270_p7, %p2264_p9 }
  0xcf   : > { %2274 = shalt.err (!%p2271_p11)
}
  0xd0   : > { %s2275_s30 = scalar_lea.vmem %s381_s22, 128  ;;  %s2434_s5 = smov [#allocation9]  }
  0xd1   : > { %p2276_p8 = scmp.ne.s32.totalorder %s381_s22, %s2275_s30  ;;  %s2280_s26 = sshll.u32 %s2434_s5, 4  ;;  %s2281_s26 = int_to_ptr.vmem [resolvable:$false] %s2280_s26 }
  0xd2   : > { %s2282_s16 = scalar_lea.vmem %s2281_s26, 256  ;;  %p2283_p13 = scmp.lt.s32.totalorder %s381_s22, %s2281_s26 }
  0xd3   : > { %p2278_p1 = pnand %p2276_p8, %p2664_p6  ;;  %p2284_p3 = scmp.lt.s32.totalorder %s2282_s16, %s2275_s30 }
  0xd5   : > { %p2279_p4 = pneg %p2278_p1  ;;  %p2285_p12 = por %p2284_p3, %p2283_p13 }
  0xd7   : > { %p2286_p0 = pnand %p2285_p12, %p2279_p4 }
  0xd9   : > { %2289 = shalt.err (!%p2286_p0)
}
  0xda   : > { %p3061_p2 = scmp.ne.s32.totalorder %s3051_s8, 0  ;;  %s2790_s1 = scalar_lea.hbm %s3005_s3, %s2637_s14 }
  0xdb   : > { %s391_s20 = scalar_lea.vmem [#allocation10], %s2634_s17  ;;  %s3062_s27 = sand.u32 1, %s2422_s10  }
  0xdc   : > { %1987 = dma.hbm_to_vmem [thread:$0]  (!%p3061_p2), %s2765_s9, 128, %s381_s22, %s2658_s4  }
  0xdd   : > { %s399_s25 = sshll.u32 %s391_s20, 4  ;;  %s388_s19 = scalar_lea.sflag [#allocation11], %s3062_s27  ;;  %s400_s25 = int_to_ptr.vmem [resolvable:$true] %s399_s25 }
  0xde   : > { %s2290_s18 = scalar_lea.hbm %s2790_s1, 128  ;;  %s2295_s22 = scalar_lea.hbm %s3005_s3, 256 }
  0xdf   : > { %p2291_p12 = scmp.ne.s32.totalorder %s2790_s1, %s2290_s18  ;;  %p2296_p5 = scmp.lt.u32.totalorder %s2790_s1, %s3005_s3 }
  0xe0   : > { %p2297_p7 = scmp.lt.u32.totalorder %s2295_s22, %s2290_s18  ;;  %p2299_p8 = scmp.lt.u32.totalorder %s2290_s18, %s2790_s1 }
  0xe1   : > { %p2293_p9 = pnand %p2291_p12, %p2664_p6 }
  0xe2   : > { %p2298_p11 = por %p2297_p7, %p2296_p5 }
  0xe3   : > { %p2294_p10 = pneg %p2293_p9 }
  0xe4   : > { %p2300_p1 = por %p2299_p8, %p2298_p11 }
  0xe6   : > { %p2301_p4 = pnand %p2300_p1, %p2294_p10 }
  0xe8   : > { %2304 = shalt.err (!%p2301_p4)
}
  0xe9   : > { %s2305_s17 = scalar_lea.vmem %s400_s25, 128  ;;  %s2435_s30 = smov [#allocation10]  }
  0xea   : > { %p2306_p13 = scmp.ne.s32.totalorder %s400_s25, %s2305_s17  ;;  %s2310_s5 = sshll.u32 %s2435_s30, 4  ;;  %s2311_s5 = int_to_ptr.vmem [resolvable:$false] %s2310_s5 }
  0xeb   : > { %s2312_s26 = scalar_lea.vmem %s2311_s5, 256  ;;  %p2313_p12 = scmp.lt.s32.totalorder %s400_s25, %s2311_s5 }
  0xec   : > { %p2308_p3 = pnand %p2306_p13, %p2664_p6  ;;  %p2314_p9 = scmp.lt.s32.totalorder %s2312_s26, %s2305_s17 }
  0xee   : > { %p2309_p0 = pneg %p2308_p3  ;;  %p2315_p2 = por %p2314_p9, %p2313_p12 }
  0xf0   : > { %p2316_p5 = pnand %p2315_p2, %p2309_p0 }
  0xf2   : > { %2319 = shalt.err (!%p2316_p5)
}
  0xf3   : > { %p3063_p7 = scmp.ne.s32.totalorder %s3051_s8, 0  ;;  %p3064_p10 = scmp.ne.s32.totalorder %s3042_s15, 0 }
  0xf4   : > { %s2815_s12 = sand.u32 (!%p3064_p10), 1, %s2406_s28   ;;  %p3065_p6 = scmp.ne.s32.totalorder (!%p3064_p10), %s3039_s13, 0 }
  0xf5   : > { %1990 = dma.hbm_to_vmem [thread:$0]  (!%p3063_p7), %s2790_s1, 128, %s400_s25, %s388_s19  }
  0xf6   : > { %408 = sbr.rel (%p3064_p10) target bundleno = 2185 (0x889), region = 52  ;;  %s2818_s16 = sshll.u32 (!%p3064_p10), %s2815_s12, 3 }
  0xf7   : > { %s411_s21 = scalar_lea.sflag (!%p3064_p10), [#allocation5], %s2815_s12  ;;  %s414_s24 = scalar_lea.vmem (!%p3064_p10), [#allocation4], %s2818_s16 }
  0xfd   : > { %2373 = dma.done.wait (%p3065_p6), %s411_s21, 128  }
  0xfe   : > { %2375 = vsyncadd (%p3065_p6), %s411_s21, 4294967168  ;;  %s419_s15 = sand.u32 1, %s2523_s11   ;;  %s423_s1 = scalar_lea.vmem [#allocation7], %s2818_s16 }
  0xff   : > { %s420_s8 = scalar_lea.sflag [#allocation8], %s419_s15 }
 0x100   : > { %2377 = dma.done.wait (%p3065_p6), %s420_s8, 256  }
 0x101   : > { %2379 = vsyncadd (%p3065_p6), %s420_s8, 4294967040  ;;  %s432_s20 = scalar_lea.vmem [#allocation9], %s2818_s16  ;;  %s438_s25 = scalar_lea.sflag [#allocation11], %s419_s15 }
 0x102   : > { %s441_s27 = scalar_lea.vmem [#allocation10], %s2818_s16 }
 0x103   : > { %2381 = dma.done.wait (%p3065_p6), %s438_s25, 128  }
 0x104   : > { %2383 = vsyncadd (%p3065_p6), %s438_s25, 4294967168  ;;  %p3066_p2 = scmp.eq.s32.totalorder %s2523_s11, 0 }
 0x106   : > { %2385 = dma.done.wait (%p3066_p2), [#allocation11], 1536   ;;  %p3067_p11 = pmov %p3066_p2 }
 0x107   : > { %p3068_p8 = pmov %p3066_p2 }
 0x108   : > { %2387 = vsyncadd (%p3067_p11), [#allocation11], 4294965760 }
 0x109   : > { %2389 = dma.done.wait (%p3068_p8), [#allocation14], 560   ;;  %p3069_p1 = pmov %p3066_p2 }
 0x10b   : > { %2391 = vsyncadd (%p3069_p1), [#allocation14], 4294966736  ;;  %p3070_p4 = pmov %p3069_p1 }
 0x10c   : > { %p3071_p13 = pmov %p3069_p1 }
 0x10d   : > { %2393 = dma.done.wait (%p3070_p4), [#allocation17], 16  }
 0x10e   : > { %2395 = vsyncadd (%p3071_p13), [#allocation17], 4294967280  ;;  %v2436_v0 = vmov 0.0|0.0   ;;  %vm2437_vm0 = vmmov 0   ;;  %v2438_v1 = vmov 0.0   ;;  %v512_v2 = vld [vmem:[#allocation12 + $0x20] sm:$0xff] }
 0x10f   : > { %1915 = vmatprep.subr.bf16.mxu0 %v2436_v0  ;;  %1839 = vmatprep.mubr.msk.f32.mxu0 %vm2437_vm0, %v2438_v1  ;;  %v513_v3 = vld [vmem:[#allocation12 + $0x28] sm:$0xff]  ;;  %v514_v4 = vld [vmem:[#allocation12 + $0x30] sm:$0xff]  ;;  %v515_v6 = vld [vmem:[#allocation12 + $0x38] sm:$0xff]  ;;  %vm524_vm1 = vcmask 261120   ;;  %v2439_v24 = vmov 0   ;;  %vm777_vm3 = vcmask 64512  }
 0x110   : > { %1921 = vmatprep.subr.bf16.mxu1 %v2436_v0  ;;  %1850 = vmatprep.mubr.msk.f32.mxu1 %vm2437_vm0, %v2438_v1  ;;  %v1916_v5 = vpack.c.bf16 %v513_v3, %v512_v2  ;;  %v1919_v7 = vpack.c.bf16 %v515_v6, %v514_v4  ;;  %v599_v8 = vld [vmem:[#allocation12 + $0x40] sm:$0xff]  ;;  %v600_v9 = vld [vmem:[#allocation12 + $0x48] sm:$0xff]  ;;  %v509_v13 = vld [vmem:[%s423_s1] sm:$0xff]  ;;  %s2440_s11 = smov 120   ;;  %s2441_s13 = smov 112   ;;  %vm1456_vm5 = vcmask 130048  }
 0x111   : > { %v687_v10 = vld [vmem:[#allocation12] sm:$0xff]  ;;  %v688_v11 = vld [vmem:[#allocation12 + $0x8] sm:$0xff]  ;;  %v1922_v12 = vpack.c.bf16 %v600_v9, %v599_v8  ;;  %v689_v15 = vld [vmem:[#allocation12 + $0x10] sm:$0xff]  ;;  %2071 = vset.pattern.permute.xlu0 %v2439_v24  ;;  %s2442_s19 = smov 104   ;;  %s2443_s18 = smov 8   ;;  %vm1458_vm6 = vcmask 195584  }
 0x112   : > { %1917 = vmatpush3.bf16.msra.mxu0 %v1916_v5  ;;  %v1928_v14 = vpack.c.bf16 %v688_v11, %v687_v10  ;;  %v690_v16 = vld [vmem:[#allocation12 + $0x18] sm:$0xff]  ;;  %v686_v18 = vld [vmem:[%s414_s24] sm:$0xff]  ;;  %v601_v19 = vld [vmem:[#allocation12 + $0x50] sm:$0xff]  ;;  %s2444_s4 = smov 16   ;;  %s3072_s9 = sld [smem:[#allocation27_spill]] }
 0x113   : > { %1918 = vmatprep.subr.bf16.mxu0 %v2436_v0  ;;  %1923 = vmatpush3.bf16.msra.mxu1 %v1922_v12  ;;  %v1931_v17 = vpack.c.bf16 %v690_v16, %v689_v15  ;;  %v602_v20 = vld [vmem:[#allocation12 + $0x58] sm:$0xff]  ;;  %v510_v22 = vld [vmem:[%s432_s20] sm:$0xff]  ;;  %s2445_s22 = smov 24   ;;  %s3073_s14 = sld [smem:[#allocation31_spill]] }
 0x114   : > { %1924 = vmatprep.subr.bf16.mxu1 %v2436_v0  ;;  %v1925_v21 = vpack.c.bf16 %v602_v20, %v601_v19  ;;  %v775_v23 = vld [vmem:[%s441_s27] sm:$0xff]  ;;  %v1771_v26 = vld [vmem:[#allocation13 + $0x1] ss:$0 sm:$0xff]  ;;  %v1775_v30 = vld [vmem:[#allocation13] ss:$0 sm:$0xff]  ;;  %s504_s17 = scalar_lea.vmem [#allocation18], %s2818_s16 }
 0x115   : > { %vm776_vm2 = vcmp.eq.f32.partialorder %v775_v23, 0.0  ;;  %v1773_v36 = vld [vmem:[#allocation13 + $0x2] ss:$0 sm:$0xff]  ;;  %s1560_s30 = sshll.u32 %s504_s17, 4  ;;  %s3074_s21 = sld [smem:[#allocation36_spill]]  ;;  %s2954_s30 = int_to_ptr.vmem [resolvable:$true] %s1560_s30 }
 0x116   : > { %1920 = vmatpush3.bf16.msra.mxu0 %v1919_v7  ;;  %v854_v25 = vsel %vm776_vm2, 1, %v2439_v24  ;;  %s1546_s15 = scalar_lea.sflag [#allocation6], %s2815_s12  ;;  %s2320_s8 = scalar_lea.vmem %s2954_s30, 128 }
 0x117   : > { %1927 = vmatprep.subr.bf16.mxu0 %v2436_v0  ;;  %1926 = vmatpush3.bf16.msra.mxu1 %v1925_v21  ;;  %p2321_p3 = scmp.ne.s32.totalorder %s2954_s30, %s2320_s8  ;;  %s2446_s16 = smov [#allocation18]  }
 0x118   : > { %1864 = vmatprep.subr.mxu1 %v2438_v1  ;;  %856 = vperm.xlu0 %2071, %v854_v25   ;;  %s1792_s23 = sshll.u32 %s3072_s9, 7  ;;  %s2324_s1 = sshll.u32 %s2446_s16, 4  ;;  %s2325_s1 = int_to_ptr.vmem [resolvable:$false] %s2324_s1 }
 0x119   : > { %1840 = vmatmul.mubr.msk.f32.vlgmr.msra.gmra.mrb[0].mxu0 %vm524_vm1, %v509_v13  ;;  %p3075_p0 = scmp.ne.s32.totalorder %s3073_s14, 0  ;;  %s2326_s20 = scalar_lea.vmem %s2325_s1, 256 }
 0x11a   : > { %1929 = vmatpush3.bf16.msra.mxu0 %v1928_v14  ;;  %1861 = vmatprep.mubr.msk.f32.mxu0 %vm2437_vm0, %v2438_v1  ;;  %p2327_p5 = scmp.lt.s32.totalorder %s2954_s30, %s2325_s1  ;;  %p2328_p7 = scmp.lt.s32.totalorder %s2326_s20, %s2320_s8 }
 0x11b   : > { %1930 = vmatprep.subr.bf16.mxu0 %v2436_v0  ;;  %1851 = vmatmul.mubr.msk.f32.vlgmr.msra.gmra.mrb[0].mxu1 %vm524_vm1, %v510_v22  ;;  %s2952_s24 = scalar_lea.hbm %s3074_s21, %s1792_s23  ;;  %p2322_p12 = pnand %p2321_p3, %p3075_p0 }
 0x11c   : > { %1866 = vmatprep.mubr.msk.f32.mxu1 %vm2437_vm0, %v2438_v1  ;;  %p2329_p10 = por %p2328_p7, %p2327_p5 }
 0x11d   : > { %p2323_p9 = pneg %p2322_p12 }
 0x11e   : > { %1932 = vmatpush3.bf16.msra.mxu0 %v1931_v17 }
 0x11f   : > { %1884 = vmatprep.subr.mxu0 %v2438_v1  ;;  %p2330_p6 = pnand %p2329_p10, %p2323_p9 }
 0x121   : > { %1862 = vmatmul.mubr.msk.f32.vlgmr.msra.gmra.mrb[2].mxu0 %vm524_vm1, %v686_v18 }
 0x122   : > { %1886 = vmatprep.mubr.msk.f32.mxu0 %vm2437_vm0, %v2438_v1 }
 0x197   : > { %v857_v45 = vpop.permute.xlu0 %856 }
 0x198   : > { %vm858_vm4 = vcmp.eq.s32.totalorder %v857_v45, 1 }
 0x1ec   : > { %v594_v27 = vpop.f32.mrb[0].mxu0 }
 0x1ed   : > { %v595_v28 = vadd.f32 %v1771_v26, %v594_v27  ;;  %v1841_v29 = vpop.f32.mrb[1].mxu0 }
 0x1ee   : > { %v680_v37 = vpop.f32.mrb[0].mxu1 }
 0x1ef   : > { %684 = vst.msk [vmem:[#allocation2] sm:$0xff] %vm524_vm1, %v595_v28  ;;  %v681_v38 = vadd.f32 %v1773_v36, %v680_v37  ;;  %v1852_v39 = vpop.f32.mrb[1].mxu1 }
 0x1f0   : > { %v1460_v39 = vld [vmem:[#allocation15] sm:$0xff] }
 0x1f1   : > { %685 = vst.msk [vmem:[#allocation3] sm:$0xff] %vm524_vm1, %v681_v38 }
 0x1f4   : > { %v768_v31 = vpop.f32.mrb[2].mxu0 }
 0x1f5   : > { %v769_v32 = vadd.f32 %v1775_v30, %v768_v31  ;;  %v1863_v33 = vpop.f32.mrb[3].mxu0 }
 0x1f6   : > { %v773_v34 = vld [vmem:[#allocation2] sm:$0xff] }
 0x1f7   : > { %v772_v35 = vmul.f32 0.35355338, %v769_v32  ;;  %946 = vrot.lane.b32.xlu1 %v773_v34, %s2440_s11  ;;  %1865 = vmatpush3.xpose.msk.msra.mxu1 %vm777_vm3, %v773_v34 }
 0x1f8   : > { %1869 = vmatprep.subr.mxu1 %v2438_v1  ;;  %v2890_v40 = vld [vmem:[#allocation3] sm:$0xff] }
 0x1fa   : > { %1867 = vmatmul.mubr.msk.f32.vlgmr.msra.gmra.mrb[2].mxu1 %vm777_vm3, %v772_v35 }
 0x1fb   : > { %944 = vrot.lane.b32.xlu1 %v772_v35, %s2440_s11  ;;  %1871 = vmatprep.mubr.msk.f32.mxu1 %vm2437_vm0, %v2438_v1 }
 0x1fc   : > { %1870 = vmatpush3.msra.mxu1 %v2890_v40 }
 0x1fd   : > { %1874 = vmatprep.subr.mxu1 %v2438_v1 }
 0x1ff   : > { %1113 = vrot.lane.b32.xlu1 %v773_v34, %s2441_s13 }
 0x203   : > { %1111 = vrot.lane.b32.xlu1 %v772_v35, %s2441_s13 }
 0x269   : > { %v947_v41 = vpop.permute.xlu1 %946 }
 0x26d   : > { %v945_v42 = vpop.permute.xlu1 %944 }
 0x271   : > { %v1114_v43 = vpop.permute.xlu1 %1113 }
 0x272   : > { %1885 = vmatpush3.xpose.msk.msra.mxu0 %vm777_vm3, %v1114_v43  ;;  %v1463_v43 = vld [vmem:[#allocation15 + $0x18] sm:$0xff] }
 0x273   : > { %1894 = vmatprep.subr.mxu0 %v2438_v1 }
 0x275   : > { %v1112_v44 = vpop.permute.xlu1 %1111 }
 0x276   : > { %1887 = vmatmul.mubr.msk.f32.vlgmr.msra.gmra.mrb[4].mxu0 %vm777_vm3, %v1112_v44 }
 0x277   : > { %1896 = vmatprep.mubr.msk.f32.mxu0 %vm2437_vm0, %v2438_v1 }
 0x2cd   : > { %v850_v46 = vpop.f32.mrb[2].mxu1 }
 0x2ce   : > { %v859_v47 = vsel %vm858_vm4, -1e+09, %v850_v46  ;;  %v1868_v48 = vpop.f32.mrb[3].mxu1 }
 0x2cf   : > { %v860_v49 = vsel %vm777_vm3, %v859_v47, -inf }
 0x2d0   : > { %861 = vmax.xlane.f32.xlu0 %v860_v49 }
 0x2e6   : > { %1277 = vrot.lane.b32.xlu0 %v772_v35, %s2442_s19 }
 0x349   : > { %v1185_v50 = vpop.f32.mrb[4].mxu0 }
 0x34a   : > { %v1189_v51 = vsel %vm858_vm4, -1e+09, %v1185_v50  ;;  %v1888_v52 = vpop.f32.mrb[5].mxu0 }
 0x34b   : > { %v1190_v53 = vsel %vm777_vm3, %v1189_v51, -inf }
 0x34c   : > { %1191 = vmax.xlane.f32.xlu0 %v1190_v53 }
 0x35d   : > { %v862_v54 = vpop.xlane.xlu0 %861 }
 0x35e   : > { %v863_v55 = vsub.f32 %v859_v47, %v862_v54 }
 0x360   : > { %v864_v56 = vmul.f32 1.442695, %v863_v55  ;;  %v1789_v55 = vld [vmem:[#allocation16] ss:$0 sm:$0xff] }
 0x361   : > { %v1278_v61 = vpop.permute.xlu0 %1277 }
 0x362   : > { %2072 = vpow2.f32 %v864_v56  ;;  %1035 = vrot.lane.b32.xlu0 %v2890_v40, %s2440_s11 }
 0x36c   : > { %v2073_v57 = vpop.eup %2072 }
 0x36d   : > { %v866_v58 = vsel %vm777_vm3, %v2073_v57, 0.0 }
 0x36e   : > { %867 = vadd.xlane.f32.xlu1 %v866_v58 }
 0x37f   : > { %1279 = vrot.lane.b32.xlu1 %v773_v34, %s2442_s19 }
 0x3d9   : > { %v1192_v63 = vpop.xlane.xlu0 %1191 }
 0x3da   : > { %v1193_v4 = vsub.f32 %v1189_v51, %v1192_v63 }
 0x3dc   : > { %v1194_v7 = vmul.f32 1.442695, %v1193_v4 }
 0x3dd   : > { %v1036_v3 = vpop.permute.xlu0 %1035 }
 0x3fb   : > { %v868_v59 = vpop.xlane.xlu1 %867 }
 0x3fc   : > { %2074 = vrcp.f32 %v868_v59 }
 0x3fd   : > { %2076 = vpow2.f32 %v1194_v7 }
 0x3ff   : > { %v1280_v60 = vpop.permute.xlu1 %1279 }
 0x400   : > { %1895 = vmatpush3.xpose.msk.msra.mxu0 %vm777_vm3, %v1280_v60 }
 0x401   : > { %1933 = vmatprep.subr.bf16.mxu0 %v2436_v0 }
 0x403   : > { %1897 = vmatmul.mubr.msk.f32.vlgmr.msra.gmra.mrb[6].mxu0 %vm777_vm3, %v1278_v61 }
 0x404   : > { %1912 = vmatprep.mubr.msk.f32.mxu0 %vm2437_vm0, %v2438_v1 }
 0x406   : > { %v2075_v62 = vpop.eup %2074 }
 0x407   : > { %v870_v2 = vmul.f32 %v2075_v62, %v2073_v57  ;;  %v2077_v16 = vpop.eup %2076 }
 0x408   : > { %v1196_v17 = vsel %vm777_vm3, %v2077_v16, 0.0 }
 0x409   : > { %1872 = vmatmul.mubr.msk.f32.vlgmr.msra.gmra.mrb[4].mxu1 %vm777_vm3, %v870_v2 }
 0x40a   : > { %1875 = vmatpush3.xpose.msk.msra.mxu1 %vm777_vm3, %v947_v41  ;;  %1876 = vmatprep.mubr.msk.f32.mxu1 %vm2437_vm0, %v2438_v1 }
 0x40b   : > { %1879 = vmatprep.subr.mxu1 %v2438_v1 }
 0x40d   : > { %1877 = vmatmul.mubr.msk.f32.vlgmr.msra.gmra.mrb[6].mxu1 %vm777_vm3, %v945_v42  ;;  %v1462_v42 = vld [vmem:[#allocation15 + $0x10] sm:$0xff] }
 0x40e   : > { %1880 = vmatpush3.msra.mxu1 %v1036_v3  ;;  %1881 = vmatprep.mubr.msk.f32.mxu1 %vm2437_vm0, %v2438_v1  ;;  %v1937_v44 = vpack.c.bf16 %v1463_v43, %v1462_v42 }
 0x40f   : > { %1889 = vmatprep.subr.mxu1 %v2438_v1 }
 0x4d6   : > { %v1351_v5 = vpop.f32.mrb[6].mxu0 }
 0x4d7   : > { %v1898_v6 = vpop.f32.mrb[7].mxu0  ;;  %v1355_v14 = vsel %vm858_vm4, -1e+09, %v1351_v5 }
 0x4d8   : > { %v1356_v15 = vsel %vm777_vm3, %v1355_v14, -inf }
 0x4dc   : > { %v2922_v8 = vpop.f32.mrb[4].mxu1 }
 0x4dd   : > { %v1873_v9 = vpop.f32.mrb[5].mxu1 }
 0x4e0   : > { %v1018_v10 = vpop.f32.mrb[6].mxu1 }
 0x4e1   : > { %v1022_v11 = vsel %vm858_vm4, -1e+09, %v1018_v10  ;;  %v1878_v12 = vpop.f32.mrb[7].mxu1 }
 0x4e2   : > { %v1023_v13 = vsel %vm777_vm3, %v1022_v11, -inf }
 0x4e3   : > { %1024 = vmax.xlane.f32.xlu1 %v1023_v13 }
 0x4e7   : > { %1357 = vmax.xlane.f32.xlu1 %v1356_v15 }
 0x4eb   : > { %1197 = vadd.xlane.f32.xlu1 %v1196_v17 }
 0x570   : > { %v1025_v18 = vpop.xlane.xlu1 %1024 }
 0x571   : > { %v1026_v24 = vsub.f32 %v1022_v11, %v1025_v18 }
 0x573   : > { %v1027_v25 = vmul.f32 1.442695, %v1026_v24 }
 0x574   : > { %v1358_v19 = vpop.xlane.xlu1 %1357 }
 0x575   : > { %v1359_v20 = vsub.f32 %v1355_v14, %v1358_v19 }
 0x577   : > { %v1360_v21 = vmul.f32 1.442695, %v1359_v20 }
 0x578   : > { %v1198_v28 = vpop.xlane.xlu1 %1197 }
 0x579   : > { %2078 = vpow2.f32 %v1360_v21 }
 0x57a   : > { %2080 = vpow2.f32 %v1027_v25 }
 0x583   : > { %v2079_v22 = vpop.eup %2078 }
 0x584   : > { %v1362_v23 = vsel %vm777_vm3, %v2079_v22, 0.0  ;;  %v2081_v26 = vpop.eup %2080 }
 0x585   : > { %1363 = vadd.xlane.f32.xlu1 %v1362_v23  ;;  %v1029_v27 = vsel %vm777_vm3, %v2081_v26, 0.0 }
 0x596   : > { %1201 = vrot.lane.b32.xlu1 %v2890_v40, %s2441_s13 }
 0x5ba   : > { %1030 = vadd.xlane.f32.xlu1 %v1029_v27 }
 0x5cb   : > { %1367 = vrot.lane.b32.xlu1 %v2890_v40, %s2442_s19  ;;  %v1461_v40 = vld [vmem:[#allocation15 + $0x8] sm:$0xff] }
 0x5cc   : > { %v1934_v41 = vpack.c.bf16 %v1461_v40, %v1460_v39 }
 0x5ce   : > { %1935 = vmatpush3.bf16.msra.mxu0 %v1934_v41 }
 0x5cf   : > { %1936 = vmatprep.subr.bf16.mxu0 %v2436_v0 }
 0x5d2   : > { %1938 = vmatpush3.bf16.msra.mxu0 %v1937_v44 }
 0x612   : > { %v1364_v29 = vpop.xlane.xlu1 %1363 }
 0x616   : > { %v1202_v30 = vpop.permute.xlu1 %1201 }
 0x647   : > { %v1031_v31 = vpop.xlane.xlu1 %1030 }
 0x648   : > { %2082 = vrcp.f32 %v1031_v31 }
 0x649   : > { %2084 = vrcp.f32 %v1198_v28 }
 0x64a   : > { %2086 = vrcp.f32 %v1364_v29 }
 0x64b   : > { %v1368_v37 = vpop.permute.xlu1 %1367 }
 0x652   : > { %v2083_v32 = vpop.eup %2082 }
 0x653   : > { %v1033_v33 = vmul.f32 %v2083_v32, %v2081_v26  ;;  %v2085_v34 = vpop.eup %2084 }
 0x654   : > { %v1200_v35 = vmul.f32 %v2085_v34, %v2077_v16  ;;  %v2087_v36 = vpop.eup %2086 }
 0x655   : > { %1882 = vmatmul.mubr.msk.f32.vlgmr.msra.gmra.mrb[8].mxu1 %vm777_vm3, %v1033_v33  ;;  %v1366_v38 = vmul.f32 %v2087_v36, %v2079_v22 }
 0x656   : > { %1890 = vmatpush3.msra.mxu1 %v1202_v30  ;;  %1891 = vmatprep.mubr.msk.f32.mxu1 %vm2437_vm0, %v2438_v1 }
 0x657   : > { %1899 = vmatprep.subr.mxu1 %v2438_v1 }
 0x659   : > { %1892 = vmatmul.mubr.msk.f32.vlgmr.msra.gmra.mrb[10].mxu1 %vm777_vm3, %v1200_v35 }
 0x65a   : > { %1900 = vmatpush3.msra.mxu1 %v1368_v37  ;;  %1901 = vmatprep.mubr.msk.f32.mxu1 %vm2437_vm0, %v2438_v1 }
 0x65d   : > { %1902 = vmatmul.mubr.msk.f32.vlgmr.msra.gmra.mrb[12].mxu1 %vm777_vm3, %v1366_v38 }
 0x728   : > { %v1107_v45 = vpop.f32.mrb[8].mxu1 }
 0x729   : > { %1444 = vrot.lane.b32.xlu0 %v1107_v45, %s2443_s18  ;;  %v1883_v46 = vpop.f32.mrb[9].mxu1 }
 0x72c   : > { %v1273_v47 = vpop.f32.mrb[10].mxu1 }
 0x72d   : > { %1448 = vrot.lane.b32.xlu1 %v1273_v47, %s2444_s4  ;;  %v1893_v1 = vpop.f32.mrb[11].mxu1 }
 0x730   : > { %v1439_v48 = vpop.f32.mrb[12].mxu1 }
 0x731   : > { %1452 = vrot.lane.b32.xlu0 %v1439_v48, %s2445_s22  ;;  %v1903_v49 = vpop.f32.mrb[13].mxu1 }
 0x79b   : > { %v1445_v50 = vpop.permute.xlu0 %1444 }
 0x79c   : > { %v1455_v51 = vsel %vm777_vm3, %v2922_v8, %v1445_v50 }
 0x79f   : > { %v1449_v0 = vpop.permute.xlu1 %1448 }
 0x7a0   : > { %v1457_v52 = vsel %vm1456_vm5, %v1455_v51, %v1449_v0 }
 0x7a3   : > { %v1453_v53 = vpop.permute.xlu0 %1452 }
 0x7a4   : > { %v1459_v54 = vsel %vm1458_vm6, %v1457_v52, %v1453_v53 }
 0x7a5   : > { %1913 = vmatmul.mubr.msk.f32.vlgmr.msra.gmra.mrb[8].mxu0 %vm524_vm1, %v1459_v54 }
 0x878   : > { %v1540_v56 = vpop.f32.mrb[8].mxu0 }
 0x879   : > { %v1541_v57 = vadd.f32 %v1789_v55, %v1540_v56  ;;  %v1914_v58 = vpop.f32.mrb[9].mxu0 }
 0x87b   : > { %1544 = vst.msk [vmem:[%s504_s17] sm:$0xff] %vm524_vm1, %v1541_v57 }
 0x87c   : > { %2333 = shalt.err (!%p2330_p6)
}
 0x87d   : > { %s2334_s12 = scalar_lea.hbm %s2952_s24, 128  ;;  %s2338_s11 = scalar_lea.hbm %s3074_s21, 256 }
 0x87e   : > { %p2335_p2 = scmp.ne.s32.totalorder %s2952_s24, %s2334_s12  ;;  %p2339_p1 = scmp.lt.u32.totalorder %s2952_s24, %s3074_s21 }
 0x87f   : > { %p2340_p4 = scmp.lt.u32.totalorder %s2338_s11, %s2334_s12  ;;  %p2342_p3 = scmp.lt.u32.totalorder %s2334_s12, %s2952_s24 }
 0x880   : > { %p2336_p11 = pnand %p2335_p2, %p3075_p0 }
 0x881   : > { %p2341_p13 = por %p2340_p4, %p2339_p1 }
 0x882   : > { %p2337_p8 = pneg %p2336_p11 }
 0x883   : > { %p2343_p12 = por %p2342_p3, %p2341_p13 }
 0x885   : > { %p2344_p9 = pnand %p2343_p12, %p2337_p8 }
 0x887   : > { %2347 = shalt.err (!%p2344_p9)
}
 0x888   : > { %1963 = dma.vmem_to_hbm [thread:$0]  (%p3075_p0), %s2954_s30, 128, %s2952_s24, %s1546_s15  }
 0x889 PF: > { %s3076_s18 = sld [smem:[#allocation26_spill]]  ;;  %s3077_s4 = sld [smem:[#allocation29_spill]] }
 0x88a   : > { %p3079_p7 = scmp.ge.s32.totalorder %s2422_s10, 2 }
 0x88f   : > { %s1572_s9 = sand.u32 1, %s3076_s18   ;;  %p3078_p5 = scmp.ne.s32.totalorder %s3077_s4, 0 }
 0x890   : > { %s1573_s22 = scalar_lea.sflag [#allocation6], %s1572_s9 }
 0x891   : > { %p1992_p10 = pnand %p3079_p7, %p3078_p5 }
 0x893   : > { %2397 = dma.done.wait (!%p1992_p10), %s1573_s22, 128  }
 0x894   : > { %2399 = vsyncadd (!%p1992_p10), %s1573_s22, 4294967168  ;;  %s32_s10 = sadd.s32 1, %s2422_s10   ;;  %s3080_s14 = sld [smem:[#allocation32_spill]] }
 0x895   : > { %p29_p6 = scmp.ge.s32.totalorder %s32_s10, 4   ;;  %s3081_s30 = sld [smem:[#allocation28_spill]] }
 0x896   : > { %s3082_s9 = sld [smem:[#allocation30_spill]]  ;;  %s3083_s27 = smov %s2406_s28 }
 0x897   : > { %s3084_s28 = smov %s2410_s29  ;;  %31 = sbr.rel (!%p29_p6) target bundleno = 17 (0x11), region = 158 }
 0x89a   : > { %s3085_s29 = smov %s3080_s14 }
 0x89e   :  { %1578 = vsyncpa [#allocation5], 1 }
 0x89f   :  { %1580 = vsyncpa [#allocation5 + $0x1], 1 }
 0x8a0   :  { %1581 = vsyncpa [#allocation8], 1 }
 0x8a1   :  { %1583 = vsyncpa [#allocation8 + $0x1], 1 }
 0x8a2   :  { %1584 = vsyncpa [#allocation11], 1 }
 0x8a3   :  { %1586 = vsyncpa [#allocation11 + $0x1], 1 }
 0x8a4   :  { %1587 = vsyncpa [#allocation14], 1 }
 0x8a5   :  { %1588 = vsyncpa [#allocation17], 1 }
 0x8a6   :  { %1589 = vsyncpa [#allocation6], 1 }
 0x8a7   :  { %1591 = vsyncpa [#allocation6 + $0x1], 1 }

</bundles_post_ra>
